<compile_context>
chip_gen: v7x
topology: tpu7x:2x2x1
jax: 0.10.0
libtpu: 0.0.40
codegen_flags: <defaults>
</compile_context>

<pallas_src>
import jax
import jax.numpy as jnp
from jax.experimental import pallas as pl
from jax.experimental.pallas import tpu as pltpu

LANES = 128
SUBLANES = 8


def _round_up(x, m):
    return ((x + m - 1) // m) * m


def mlp_softmax_kernel(x_ref, w1_ref, b1_ref, w2_ref, b2_ref, o_ref):
    # Cast the streamed f32 X tile to bf16 for the MXU (VPU cast, free here).
    x = x_ref[...].astype(w1_ref.dtype)

    # Hidden layer: MXU matmul (bf16 operands, f32 accumulation), bias + ReLU in f32.
    h = jnp.dot(x, w1_ref[...], preferred_element_type=jnp.float32)
    h = jnp.maximum(h + b1_ref[...], 0.0)                    # (TM, n_hidden_p) f32

    # Output layer: cast activations to bf16 for the MXU, accumulate in f32.
    logits = jnp.dot(h.astype(w2_ref.dtype), w2_ref[...],
                     preferred_element_type=jnp.float32)
    logits = logits + b2_ref[...]                            # padded classes get -1e30

    # Row-max-stabilized softmax (identical math; padded lanes -> exp(...) = 0).
    m = jnp.max(logits, axis=1, keepdims=True)
    e = jnp.exp(logits - m)
    denom = jnp.sum(e, axis=1, keepdims=True)
    # Exact reciprocal (approx=False) so 1e-4 parity with the reference holds.
    o_ref[...] = (e * pl.reciprocal(denom)).astype(o_ref.dtype)


def softmax_regression_forward(x_nchw, w1, b1, w2, b2, *, tm=512,
                               mxu_dtype=jnp.bfloat16, out_dtype=jnp.float32):
    """x_nchw: [B, C, H, W]; W1 [n_inputs, n_hidden], W2 [n_hidden, n_out]."""
    n_inputs, n_hidden = w1.shape
    n_out = w2.shape[1]

    # Metadata-only reshape; X is passed to the kernel in its producer dtype.
    x2d = x_nchw.reshape(-1, n_inputs)
    B = x2d.shape[0]

    # --- lane-dense padding of hidden / class dims (numerically exact) ---------
    n_hidden_p = _round_up(max(n_hidden, LANES), LANES)
    n_out_p = _round_up(max(n_out, LANES), LANES)

    w1_p = jnp.zeros((n_inputs, n_hidden_p), mxu_dtype)
    w1_p = w1_p.at[:, :n_hidden].set(w1.astype(mxu_dtype))
    b1_p = jnp.zeros((1, n_hidden_p), jnp.float32)
    b1_p = b1_p.at[:, :n_hidden].set(b1.astype(jnp.float32).reshape(1, n_hidden))

    w2_p = jnp.zeros((n_hidden_p, n_out_p), mxu_dtype)
    w2_p = w2_p.at[:n_hidden, :n_out].set(w2.astype(mxu_dtype))
    # Padded classes: large negative f32 bias => exp underflows to 0 (excluded from sum).
    b2_p = jnp.full((1, n_out_p), -1e30, jnp.float32)
    b2_p = b2_p.at[:, :n_out].set(b2.astype(jnp.float32).reshape(1, n_out))

    # --- batch tiling ----------------------------------------------------------
    # Clamp the tile for small B; keep >= 2 grid steps when the batch allows so
    # v7x's two TensorCores both get work on the "parallel" axis.  Batch
    # remainder is handled by Pallas partial-block masking (no X padding).
    tm = min(tm, _round_up(B, SUBLANES))
    if B > 2 * SUBLANES and pl.cdiv(B, tm) < 2:
        tm = _round_up(pl.cdiv(B, 2), SUBLANES)
    tm = max(SUBLANES, tm)
    grid = (pl.cdiv(B, tm),)

    out_p = pl.pallas_call(
        mlp_softmax_kernel,
        out_shape=jax.ShapeDtypeStruct((B, n_out_p), out_dtype),
        grid=grid,
        in_specs=[
            pl.BlockSpec((tm, n_inputs), lambda i: (i, 0)),          # X tile per step (f32, no pre-pass)
            pl.BlockSpec((n_inputs, n_hidden_p), lambda i: (0, 0)),  # W1 resident
            pl.BlockSpec((1, n_hidden_p), lambda i: (0, 0)),         # b1 resident
            pl.BlockSpec((n_hidden_p, n_out_p), lambda i: (0, 0)),   # W2 resident
            pl.BlockSpec((1, n_out_p), lambda i: (0, 0)),            # b2 resident
        ],
        out_specs=pl.BlockSpec((tm, n_out_p), lambda i: (i, 0)),     # lane-dense store
        compiler_params=pltpu.CompilerParams(
            dimension_semantics=("parallel",)),                      # batch is independent
    )(x2d, w1_p, b1_p, w2_p, b2_p)

    # Drop class padding outside the kernel (batch dim is already exactly B).
    return out_p[:, :n_out]


def xavier_uniform(key, shape):
    fan_in, fan_out = shape
    limit = jnp.sqrt(6.0 / (fan_in + fan_out))
    return jax.random.uniform(key, shape, jnp.float32, minval=-limit, maxval=limit)


if __name__ == "__main__":
    # Shapes consistent with the module's forward:
    #   X: [2, 4, 16, 16]  ->  n_inputs = 4*16*16 = 1024
    B, C, H, W = 2, 4, 16, 16
    n_inputs = C * H * W
    n_hidden = 32
    n_out = 10

    key = jax.random.PRNGKey(0)
    kx, kw1, kw2, kx2 = jax.random.split(key, 4)

    x = jax.random.normal(kx, (B, C, H, W), jnp.float32)

    # Deterministic parameter init matching the module (xavier_uniform_ weights,
    # zero biases).
    W1 = xavier_uniform(kw1, (n_inputs, n_hidden))
    b1 = jnp.zeros((n_hidden,), jnp.float32)
    W2 = xavier_uniform(kw2, (n_hidden, n_out))
    b2 = jnp.zeros((n_out,), jnp.float32)

    def ref_forward(x_in):
        # Pure-JAX reference of the same math (bf16 MXU operands, f32 accumulation).
        x2d = x_in.reshape(-1, n_inputs)
        h = jnp.maximum(
            jnp.dot(x2d.astype(jnp.bfloat16), W1.astype(jnp.bfloat16),
                    preferred_element_type=jnp.float32) + b1, 0.0)
        logits = jnp.dot(h.astype(jnp.bfloat16), W2.astype(jnp.bfloat16),
                         preferred_element_type=jnp.float32) + b2
        e = jnp.exp(logits - logits.max(axis=1, keepdims=True))
        return e / e.sum(axis=1, keepdims=True)

    out = jax.block_until_ready(softmax_regression_forward(x, W1, b1, W2, b2))
    ref = ref_forward(x)

    assert out.shape == (B, n_out)
    assert jnp.allclose(out, ref, atol=1e-4, rtol=1e-4), (
        f"max abs diff = {jnp.max(jnp.abs(out - ref))}")
    assert jnp.allclose(out.sum(axis=1), 1.0, atol=1e-5)

    # Second check: multi-step grid + partial last tile (B=20, tm=8 -> 3 steps,
    # 4-row remainder handled by Pallas OOB masking).
    x2 = jax.random.normal(kx2, (20, C, H, W), jnp.float32)
    out2 = jax.block_until_ready(
        softmax_regression_forward(x2, W1, b1, W2, b2, tm=8))
    ref2 = ref_forward(x2)
    assert out2.shape == (20, n_out)
    assert jnp.allclose(out2, ref2, atol=1e-4, rtol=1e-4), (
        f"max abs diff (tiled) = {jnp.max(jnp.abs(out2 - ref2))}")
    assert jnp.allclose(out2.sum(axis=1), 1.0, atol=1e-5)

    print("KERNEL_OK")
</pallas_src>

<mosaic_0001>
module attributes {stable_mosaic.version = 11 : i64} {
  func.func @mlp_softmax_kernel(%arg0: i32, %arg1: memref<8x1024xf32, #tpu.memory_space<vmem>>, %arg2: memref<1024x128xbf16, #tpu.memory_space<vmem>>, %arg3: memref<1x128xf32, #tpu.memory_space<vmem>>, %arg4: memref<128x128xbf16, #tpu.memory_space<vmem>>, %arg5: memref<1x128xf32, #tpu.memory_space<vmem>>, %arg6: memref<8x128xf32, #tpu.memory_space<vmem>>) attributes {dimension_semantics = [#tpu.dimension_semantics<parallel>], iteration_bounds = array<i64: 1>, scalar_prefetch = 0 : i64, scratch_operands = 0 : i64, tpu.core_type = #tpu.core_type<tc>, window_params = [{transform_indices = @transform_0, window_bounds = array<i64: 8, 1024>}, {pipeline_mode = #tpu.pipeline_mode<synchronous>, transform_indices = @transform_1, window_bounds = array<i64: 1024, 128>}, {pipeline_mode = #tpu.pipeline_mode<synchronous>, transform_indices = @transform_2, window_bounds = array<i64: 1, 128>}, {pipeline_mode = #tpu.pipeline_mode<synchronous>, transform_indices = @transform_3, window_bounds = array<i64: 128, 128>}, {pipeline_mode = #tpu.pipeline_mode<synchronous>, transform_indices = @transform_4, window_bounds = array<i64: 1, 128>}, {transform_indices = @transform_5, window_bounds = array<i64: 8, 128>}]} {
    %c0 = arith.constant 0 : index
    %c0_0 = arith.constant 0 : index
    %0 = vector.load %arg1[%c0, %c0_0] : memref<8x1024xf32, #tpu.memory_space<vmem>>, vector<8x1024xf32>
    %1 = arith.truncf %0 : vector<8x1024xf32> to vector<8x1024xbf16>
    %c0_1 = arith.constant 0 : index
    %c0_2 = arith.constant 0 : index
    %2 = vector.load %arg2[%c0_1, %c0_2] : memref<1024x128xbf16, #tpu.memory_space<vmem>>, vector<1024x128xbf16>
    %cst = arith.constant dense<0.000000e+00> : vector<8x128xf32>
    %3 = tpu.matmul %1, %2, %cst {dimension_numbers = #tpu.dot_dimension_numbers<[1], [0], [0], [1], [0, 0, 1, 1], [], []>} : vector<8x1024xbf16>, vector<1024x128xbf16>, vector<8x128xf32> -> vector<8x128xf32>
    %c0_3 = arith.constant 0 : index
    %c0_4 = arith.constant 0 : index
    %4 = vector.load %arg3[%c0_3, %c0_4] : memref<1x128xf32, #tpu.memory_space<vmem>>, vector<1x128xf32>
    %5 = vector.broadcast %4 : vector<1x128xf32> to vector<8x128xf32>
    %6 = arith.addf %3, %5 : vector<8x128xf32>
    %cst_5 = arith.constant 0.000000e+00 : f32
    %7 = vector.broadcast %cst_5 : f32 to vector<8x128xf32>
    %8 = arith.maximumf %6, %7 : vector<8x128xf32>
    %9 = arith.truncf %8 : vector<8x128xf32> to vector<8x128xbf16>
    %c0_6 = arith.constant 0 : index
    %c0_7 = arith.constant 0 : index
    %10 = vector.load %arg4[%c0_6, %c0_7] : memref<128x128xbf16, #tpu.memory_space<vmem>>, vector<128x128xbf16>
    %cst_8 = arith.constant dense<0.000000e+00> : vector<8x128xf32>
    %11 = tpu.matmul %9, %10, %cst_8 {dimension_numbers = #tpu.dot_dimension_numbers<[1], [0], [0], [1], [0, 0, 1, 1], [], []>} : vector<8x128xbf16>, vector<128x128xbf16>, vector<8x128xf32> -> vector<8x128xf32>
    %c0_9 = arith.constant 0 : index
    %c0_10 = arith.constant 0 : index
    %12 = vector.load %arg5[%c0_9, %c0_10] : memref<1x128xf32, #tpu.memory_space<vmem>>, vector<1x128xf32>
    %13 = vector.broadcast %12 : vector<1x128xf32> to vector<8x128xf32>
    %14 = arith.addf %11, %13 : vector<8x128xf32>
    %cst_11 = arith.constant dense<0xFF800000> : vector<8xf32>
    %15 = vector.multi_reduction <maximumf>, %14, %cst_11 [1] : vector<8x128xf32> to vector<8xf32>
    %16 = vector.shape_cast %15 : vector<8xf32> to vector<8x1xf32>
    %17 = vector.broadcast %16 : vector<8x1xf32> to vector<8x128xf32>
    %18 = arith.subf %14, %17 : vector<8x128xf32>
    %19 = math.exp %18 : vector<8x128xf32>
    %cst_12 = arith.constant dense<0.000000e+00> : vector<8xf32>
    %20 = vector.multi_reduction <add>, %19, %cst_12 [1] : vector<8x128xf32> to vector<8xf32>
    %21 = vector.shape_cast %20 : vector<8xf32> to vector<8x1xf32>
    %22 = tpu.reciprocal %21 : vector<8x1xf32> -> vector<8x1xf32>
    %23 = vector.broadcast %22 : vector<8x1xf32> to vector<8x128xf32>
    %24 = arith.mulf %19, %23 : vector<8x128xf32>
    %c0_13 = arith.constant 0 : index
    %c0_14 = arith.constant 0 : index
    %25 = vector.load %arg6[%c0_13, %c0_14] : memref<8x128xf32, #tpu.memory_space<vmem>>, vector<8x128xf32>
    tpu.vector_store %arg6[%c0_13, %c0_14], %24 {strides = array<i32>} : memref<8x128xf32, #tpu.memory_space<vmem>>, vector<8x128xf32>,
    return
  }
  func.func @transform_0(%arg0: i32) -> (i32, i32) {
    %c0_i32 = arith.constant 0 : i32
    %c0_i32_0 = arith.constant 0 : i32
    return %arg0, %c0_i32 : i32, i32
  }
  func.func @transform_1(%arg0: i32) -> (i32, i32) {
    %c0_i32 = arith.constant 0 : i32
    %c0_i32_0 = arith.constant 0 : i32
    %c0_i32_1 = arith.constant 0 : i32
    return %c0_i32, %c0_i32_0 : i32, i32
  }
  func.func @transform_2(%arg0: i32) -> (i32, i32) {
    %c0_i32 = arith.constant 0 : i32
    %c0_i32_0 = arith.constant 0 : i32
    %c0_i32_1 = arith.constant 0 : i32
    return %c0_i32, %c0_i32_0 : i32, i32
  }
  func.func @transform_3(%arg0: i32) -> (i32, i32) {
    %c0_i32 = arith.constant 0 : i32
    %c0_i32_0 = arith.constant 0 : i32
    %c0_i32_1 = arith.constant 0 : i32
    return %c0_i32, %c0_i32_0 : i32, i32
  }
  func.func @transform_4(%arg0: i32) -> (i32, i32) {
    %c0_i32 = arith.constant 0 : i32
    %c0_i32_0 = arith.constant 0 : i32
    %c0_i32_1 = arith.constant 0 : i32
    return %c0_i32, %c0_i32_0 : i32, i32
  }
  func.func @transform_5(%arg0: i32) -> (i32, i32) {
    %c0_i32 = arith.constant 0 : i32
    %c0_i32_0 = arith.constant 0 : i32
    return %arg0, %c0_i32 : i32, i32
  }
}

</mosaic_0001>

<bundles_post_ra>
// kernel: tpu_custom_call.1
= control target key start
LH: loop header
LB: loop body
LE: loop exit
PB: predicated region body
PF: predicated region fallthrough
CT: control target
= control target key end

     0   :  { %10 = vsyncpa [#allocation3], 0  ;;  %s1486_s0 = inlined_call_operand.hbm [shape: f32[2,1024], index: 0, kind: input, shape index: {}]   ;;  %s1487_s1 = inlined_call_operand.hbm [shape: bf16[1024,128], index: 1, kind: input, shape index: {}]   ;;  %s1488_s2 = inlined_call_operand.vmem [shape: f32[1,128], index: 2, kind: input, shape index: {}]   ;;  %s1489_s3 = inlined_call_operand.hbm [shape: bf16[128,128], index: 3, kind: input, shape index: {}]   ;;  %s1490_s4 = inlined_call_operand.vmem [shape: f32[1,128], index: 4, kind: input, shape index: {}]   ;;  %s1491_s5 = inlined_call_operand.hbm [shape: f32[2,128], index: 5, kind: output, shape index: {}]  }
   0x1   :  { %11 = vsyncpa [#allocation6], 0 }
   0x2   :  { %12 = vsyncpa [#allocation4], 0 }
   0x3   :  { %17 = vsyncadd [#allocation3], 768  ;;  %s1373_s18 = smov [#allocation5]   ;;  %s1279_s22 = scalar_lea.hbm %s1487_s1, 8192 }
   0x4   :  { %s30_s19 = sshll.u32 %s1373_s18, 4  ;;  %p1280_p0 = scmp.ne.s32.totalorder %s1487_s1, %s1279_s22  ;;  %s31_s19 = int_to_ptr.vmem [resolvable:$true] %s30_s19 }
   0x5   :  { %p1283_p1 = scmp.lt.u32.totalorder %s1279_s22, %s1487_s1 }
   0x7   :  { %p1285_p2 = pnand %p1283_p1, %p1280_p0 }
   0x9   :  { %1288 = shalt.err (!%p1285_p2)
}
   0xa   :  { %s1289_s27 = scalar_lea.vmem %s31_s19, 8192  ;;  %p1294_p4 = scmp.lt.s32.totalorder %s31_s19, %s31_s19 }
   0xb   :  { %p1290_p3 = scmp.ne.s32.totalorder %s31_s19, %s1289_s27  ;;  %p1295_p5 = scmp.lt.s32.totalorder %s1289_s27, %s1289_s27 }
   0xd   :  { %p1296_p6 = por %p1295_p5, %p1294_p4 }
   0xf   :  { %p1297_p7 = pnand %p1296_p6, %p1290_p3 }
  0x11   :  { %1300 = shalt.err (!%p1297_p7)
}
  0x12   :  { %s1374_s28 = smov 64   ;;  %s1375_s29 = smov 4  }
  0x13   :  { %36 = dma.hbm_to_vmem [thread:$0]  %s1487_s1, 8192, %s31_s19, [#allocation6], %s1374_s28, %s1374_s28, %s1375_s29  }
  0x14   :  { %s1376_s7 = smov [#allocation2]   ;;  %s1301_s11 = scalar_lea.hbm %s1486_s0, 256 }
  0x15   :  { %s18_s8 = sshll.u32 %s1376_s7, 4  ;;  %p1302_p8 = scmp.ne.s32.totalorder %s1486_s0, %s1301_s11  ;;  %s19_s8 = int_to_ptr.vmem [resolvable:$true] %s18_s8 }
  0x16   :  { %p1305_p9 = scmp.lt.u32.totalorder %s1301_s11, %s1486_s0 }
  0x18   :  { %p1307_p10 = pnand %p1305_p9, %p1302_p8 }
  0x1a   :  { %1310 = shalt.err (!%p1307_p10)
}
  0x1b   :  { %s1311_s16 = scalar_lea.vmem %s19_s8, 256  ;;  %s1315_s1 = scalar_lea.vmem %s19_s8, 1024 }
  0x1c   :  { %p1312_p11 = scmp.ne.s32.totalorder %s19_s8, %s1311_s16  ;;  %p1316_p12 = scmp.lt.s32.totalorder %s19_s8, %s19_s8 }
  0x1d   :  { %p1317_p13 = scmp.lt.s32.totalorder %s1315_s1, %s1311_s16 }
  0x1f   :  { %p1318_p0 = por %p1317_p13, %p1316_p12 }
  0x21   :  { %p1319_p1 = pnand %p1318_p0, %p1312_p11 }
  0x23   :  { %1322 = shalt.err (!%p1319_p1)
}
  0x24   :  { %s1377_s17 = smov 256   ;;  %s1378_s18 = smov 16  }
  0x25   :  { %24 = dma.hbm_to_vmem [thread:$0]  %s1486_s0, 256, %s19_s8, [#allocation3], %s1377_s17, %s1377_s17, %s1378_s18  }
  0x26   :  { %s1379_s21 = smov [#allocation7]   ;;  %s1323_s25 = scalar_lea.hbm %s1489_s3, 1024 }
  0x27   :  { %s44_s22 = sshll.u32 %s1379_s21, 4  ;;  %p1324_p2 = scmp.ne.s32.totalorder %s1489_s3, %s1323_s25  ;;  %s45_s22 = int_to_ptr.vmem [resolvable:$true] %s44_s22 }
  0x28   :  { %p1327_p3 = scmp.lt.u32.totalorder %s1323_s25, %s1489_s3 }
  0x2a   :  { %p1329_p4 = pnand %p1327_p3, %p1324_p2 }
  0x2c   :  { %1332 = shalt.err (!%p1329_p4)
}
  0x2d   :  { %s1333_s7 = scalar_lea.vmem %s45_s22, 1024  ;;  %p1338_p6 = scmp.lt.s32.totalorder %s45_s22, %s45_s22 }
  0x2e   :  { %p1334_p5 = scmp.ne.s32.totalorder %s45_s22, %s1333_s7  ;;  %p1339_p7 = scmp.lt.s32.totalorder %s1333_s7, %s1333_s7 }
  0x30   :  { %p1340_p8 = por %p1339_p7, %p1338_p6 }
  0x32   :  { %p1341_p9 = pnand %p1340_p8, %p1334_p5 }
  0x34   :  { %1344 = shalt.err (!%p1341_p9)
}
  0x35   :  { %50 = dma.hbm_to_vmem [thread:$0]  %s1489_s3, 1024, %s45_s22, [#allocation6], %s1374_s28, %s1374_s28, %s1375_s29  }
  0x36   :  { %1367 = dma.done.wait [#allocation3], 1024  }
  0x37   :  { %1368 = vsyncadd [#allocation3], 4294966272 }
  0x38   :  { %1369 = dma.done.wait [#allocation6], 9216  }
  0x39   :  { %1370 = vsyncadd [#allocation6], 4294958080  ;;  %v1191_v0 = vld [vmem:[#allocation5 + $0x40] sm:$0xff]   ;;  %v1195_v4 = vld [vmem:[#allocation5 + $0x48] sm:$0xff]   ;;  %v1380_v24 = vmov 1983009808   ;;  %v86_v26 = vlaneseq }
  0x3a   :  { %v1192_v1 = vld [vmem:[#allocation5 + $0xc0] sm:$0xff]   ;;  %1061 = vmatprep.subr.bf16.mxu0 %v1191_v0  ;;  %v1196_v5 = vld [vmem:[#allocation5 + $0xc8] sm:$0xff]   ;;  %v1199_v8 = vld [vmem:[#allocation5 + $0x50] sm:$0xff]   ;;  %v84_v25 = vunpack.c.l.s4 %v1380_v24  ;;  %vm1382_vm0 = vmmov 0  }
  0x3b   :  { %v1193_v2 = vld [vmem:[#allocation5] sm:$0xff]   ;;  %1083 = vmatprep.subr.bf16.mxu1 %v1192_v1  ;;  %v1197_v6 = vld [vmem:[#allocation5 + $0x8] sm:$0xff]   ;;  %v1200_v9 = vld [vmem:[#allocation5 + $0xd0] sm:$0xff]   ;;  %v87_v32 = vshrl.u32 %v86_v26, 7 }
  0x3c   :  { %v1194_v3 = vld [vmem:[#allocation5 + $0x80] sm:$0xff]   ;;  %1062 = vmatpush3.bf16.msra.mxu0 %v1193_v2  ;;  %v1198_v7 = vld [vmem:[#allocation5 + $0x88] sm:$0xff]   ;;  %v1201_v10 = vld [vmem:[#allocation5 + $0x10] sm:$0xff]   ;;  %v85_v31 = vunpack.c.0.s8 %v84_v25 }
  0x3d   :  { %1084 = vmatpush3.bf16.msra.mxu1 %v1194_v3  ;;  %1063 = vmatprep.subr.bf16.mxu0 %v1195_v4  ;;  %v1202_v11 = vld [vmem:[#allocation5 + $0x90] sm:$0xff]   ;;  %v1203_v12 = vld [vmem:[#allocation5 + $0x58] sm:$0xff]   ;;  %v1207_v16 = vld [vmem:[#allocation5 + $0x60] sm:$0xff]  }
  0x3e   :  { %1085 = vmatprep.subr.bf16.mxu1 %v1196_v5  ;;  %v1204_v13 = vld [vmem:[#allocation5 + $0xd8] sm:$0xff]   ;;  %v1208_v17 = vld [vmem:[#allocation5 + $0xe0] sm:$0xff]   ;;  %v1211_v20 = vld [vmem:[#allocation5 + $0x68] sm:$0xff]   ;;  %v1458_v37 = vsub.s32 %v85_v31, %v87_v32 }
  0x3f   :  { %v1205_v14 = vld [vmem:[#allocation5 + $0x18] sm:$0xff]   ;;  %v1209_v18 = vld [vmem:[#allocation5 + $0x20] sm:$0xff]   ;;  %v1212_v21 = vld [vmem:[#allocation5 + $0xe8] sm:$0xff]  }
  0x40   :  { %1064 = vmatpush3.bf16.msra.mxu0 %v1197_v6  ;;  %v1206_v15 = vld [vmem:[#allocation5 + $0x98] sm:$0xff]   ;;  %v1210_v19 = vld [vmem:[#allocation5 + $0xa0] sm:$0xff]   ;;  %v1213_v22 = vld [vmem:[#allocation5 + $0x28] sm:$0xff]  }
  0x41   :  { %1086 = vmatpush3.bf16.msra.mxu1 %v1198_v7  ;;  %1065 = vmatprep.subr.bf16.mxu0 %v1199_v8  ;;  %v1214_v23 = vld [vmem:[#allocation5 + $0xa8] sm:$0xff]   ;;  %v1215_v27 = vld [vmem:[#allocation5 + $0x70] sm:$0xff]   ;;  %v1219_v33 = vld [vmem:[#allocation5 + $0x78] sm:$0xff]  }
  0x42   :  { %1087 = vmatprep.subr.bf16.mxu1 %v1200_v9  ;;  %v1216_v28 = vld [vmem:[#allocation5 + $0xf0] sm:$0xff]   ;;  %v1220_v34 = vld [vmem:[#allocation5 + $0xf8] sm:$0xff]   ;;  %v1229_v44 = vld [vmem:[#allocation5 + $0x140] sm:$0xff]  }
  0x43   :  { %v1217_v29 = vld [vmem:[#allocation5 + $0x30] sm:$0xff]   ;;  %v1221_v35 = vld [vmem:[#allocation5 + $0x38] sm:$0xff]   ;;  %v1230_v47 = vld [vmem:[#allocation5 + $0x1c0] sm:$0xff]  }
  0x44   :  { %1066 = vmatpush3.bf16.msra.mxu0 %v1201_v10  ;;  %v1218_v30 = vld [vmem:[#allocation5 + $0xb0] sm:$0xff]   ;;  %v1222_v36 = vld [vmem:[#allocation5 + $0xb8] sm:$0xff]   ;;  %v1231_v50 = vld [vmem:[#allocation5 + $0x100] sm:$0xff]  }
  0x45   :  { %1088 = vmatpush3.bf16.msra.mxu1 %v1202_v11  ;;  %1067 = vmatprep.subr.bf16.mxu0 %v1203_v12  ;;  %v1223_v38 = vld [vmem:[#allocation2] ss:$16 sps:$4 sm:$0xff]   ;;  %v1227_v40 = vld [vmem:[#allocation2 + $0x4] ss:$16 sps:$4 sm:$0xff]   ;;  %v1233_v56 = vld [vmem:[#allocation5 + $0x148] sm:$0xff]  }
  0x46   :  { %1089 = vmatprep.subr.bf16.mxu1 %v1204_v13  ;;  %v1225_v39 = vld [vmem:[#allocation2 + $0x20] ss:$16 sps:$4 sm:$0xff]   ;;  %v1228_v41 = vld [vmem:[#allocation2 + $0x24] ss:$16 sps:$4 sm:$0xff]   ;;  %v89_v42 = vrot.slane %v1223_v38, %v1458_v37  ;;  %v96_v45 = vrot.slane %v1227_v40, %v1458_v37  ;;  %v1234_v59 = vld [vmem:[#allocation5 + $0x1c8] sm:$0xff]   ;;  %v1381_v40 = vmov 0.0  }
  0x47   :  { %v103_v43 = vrot.slane %v1225_v39, %v1458_v37  ;;  %v110_v46 = vrot.slane %v1228_v41, %v1458_v37  ;;  %v1232_v53 = vld [vmem:[#allocation5 + $0x180] sm:$0xff]   ;;  %v1235_v60 = vld [vmem:[#allocation5 + $0x108] sm:$0xff]   ;;  %v1237_v62 = vld [vmem:[#allocation5 + $0x150] sm:$0xff]  }
  0x48   :  { %1068 = vmatpush3.bf16.msra.mxu0 %v1205_v14  ;;  %v1236_v61 = vld [vmem:[#allocation5 + $0x188] sm:$0xff]   ;;  %v1238_v63 = vld [vmem:[#allocation5 + $0x1d0] sm:$0xff]   ;;  %v1241_v2 = vld [vmem:[#allocation5 + $0x158] sm:$0xff]  }
  0x49   :  { %1090 = vmatpush3.bf16.msra.mxu1 %v1206_v15  ;;  %1069 = vmatprep.subr.bf16.mxu0 %v1207_v16  ;;  %v112_v48 = vcombine.high %v89_v42, %v103_v43  ;;  %v111_v49 = vcombine.low %v89_v42, %v103_v43  ;;  %v114_v51 = vcombine.high %v96_v45, %v110_v46  ;;  %v1239_v0 = vld [vmem:[#allocation5 + $0x110] sm:$0xff]   ;;  %v1242_v3 = vld [vmem:[#allocation5 + $0x1d8] sm:$0xff]   ;;  %v1245_v6 = vld [vmem:[#allocation5 + $0x160] sm:$0xff]  }
  0x4a   :  { %1091 = vmatprep.subr.bf16.mxu1 %v1208_v17  ;;  %v113_v52 = vcombine.low %v96_v45, %v110_v46  ;;  %v1240_v1 = vld [vmem:[#allocation5 + $0x190] sm:$0xff]   ;;  %v1243_v4 = vld [vmem:[#allocation5 + $0x118] sm:$0xff]   ;;  %v1246_v7 = vld [vmem:[#allocation5 + $0x1e0] sm:$0xff]  }
  0x4b   :  { %v160_v54 = vpack.c.bf16 %v112_v48, %v112_v48  ;;  %v159_v55 = vpack.c.bf16 %v111_v49, %v111_v49  ;;  %v162_v57 = vpack.c.bf16 %v114_v51, %v114_v51  ;;  %v1244_v5 = vld [vmem:[#allocation5 + $0x198] sm:$0xff]   ;;  %v1247_v8 = vld [vmem:[#allocation5 + $0x120] sm:$0xff]   ;;  %v1249_v10 = vld [vmem:[#allocation5 + $0x168] sm:$0xff]  }
  0x4c   :  { %1070 = vmatpush3.bf16.msra.mxu0 %v1209_v18  ;;  %v161_v58 = vpack.c.bf16 %v113_v52, %v113_v52  ;;  %v1248_v9 = vld [vmem:[#allocation5 + $0x1a0] sm:$0xff]   ;;  %v1250_v11 = vld [vmem:[#allocation5 + $0x1e8] sm:$0xff]   ;;  %v1253_v14 = vld [vmem:[#allocation5 + $0x170] sm:$0xff]  }
  0x4d   :  { %1092 = vmatpush3.bf16.msra.mxu1 %v1210_v19  ;;  %1071 = vmatprep.subr.bf16.mxu0 %v1211_v20  ;;  %v1251_v12 = vld [vmem:[#allocation5 + $0x128] sm:$0xff]   ;;  %v1254_v15 = vld [vmem:[#allocation5 + $0x1f0] sm:$0xff]   ;;  %v1257_v18 = vld [vmem:[#allocation5 + $0x178] sm:$0xff]  }
  0x4e   :  { %1093 = vmatprep.subr.bf16.mxu1 %v1212_v21  ;;  %718 = vmatprep.mubr.bf16.mxu0 %v160_v54  ;;  %v1252_v13 = vld [vmem:[#allocation5 + $0x1a8] sm:$0xff]   ;;  %v1255_v16 = vld [vmem:[#allocation5 + $0x130] sm:$0xff]   ;;  %v1258_v19 = vld [vmem:[#allocation5 + $0x1f8] sm:$0xff]  }
  0x4f   :  { %758 = vmatprep.mubr.bf16.mxu1 %v162_v57  ;;  %v1256_v17 = vld [vmem:[#allocation5 + $0x1b0] sm:$0xff]   ;;  %v1259_v20 = vld [vmem:[#allocation5 + $0x138] sm:$0xff]   ;;  %v1267_v39 = vld [vmem:[#allocation7] sm:$0xff]  }
  0x50   :  { %1072 = vmatpush3.bf16.msra.mxu0 %v1213_v22  ;;  %v1260_v21 = vld [vmem:[#allocation5 + $0x1b8] sm:$0xff]   ;;  %v1268_v41 = vld [vmem:[#allocation7 + $0x8] sm:$0xff]   ;;  %v1271_v43 = vld [vmem:[#allocation7 + $0x20] sm:$0xff]  }
  0x51   :  { %1094 = vmatpush3.bf16.msra.mxu1 %v1214_v23  ;;  %1073 = vmatprep.subr.bf16.mxu0 %v1215_v27  ;;  %v1261_v22 = vld [vmem:[#allocation2 + $0x8] ss:$16 sps:$4 sm:$0xff]   ;;  %v1265_v24 = vld [vmem:[#allocation2 + $0xc] ss:$16 sps:$4 sm:$0xff]   ;;  %v1273_v45 = vld [vmem:[#allocation7 + $0x30] sm:$0xff]  }
  0x52   :  { %1095 = vmatprep.subr.bf16.mxu1 %v1216_v28  ;;  %v1263_v23 = vld [vmem:[#allocation2 + $0x28] ss:$16 sps:$4 sm:$0xff]   ;;  %v1266_v25 = vld [vmem:[#allocation2 + $0x2c] ss:$16 sps:$4 sm:$0xff]   ;;  %v125_v26 = vrot.slane %v1261_v22, %v1458_v37  ;;  %v132_v28 = vrot.slane %v1265_v24, %v1458_v37  ;;  %v987_v49 = vld [vmem:[%s1488_s2] ss:$0 sm:$0xff] }
  0x53   :  { %v139_v27 = vrot.slane %v1263_v23, %v1458_v37  ;;  %v1270_v42 = vld [vmem:[#allocation7 + $0x18] sm:$0xff]  }
  0x54   :  { %1074 = vmatpush3.bf16.msra.mxu0 %v1217_v29  ;;  %v146_v29 = vrot.slane %v1266_v25, %v1458_v37  ;;  %v1269_v37 = vld [vmem:[#allocation7 + $0x10] sm:$0xff]   ;;  %v1274_v46 = vld [vmem:[#allocation7 + $0x38] sm:$0xff]  }
  0x55   :  { %1096 = vmatpush3.bf16.msra.mxu1 %v1218_v30  ;;  %1075 = vmatprep.subr.bf16.mxu0 %v1219_v33  ;;  %v148_v30 = vcombine.high %v125_v26, %v139_v27  ;;  %v147_v31 = vcombine.low %v125_v26, %v139_v27 }
  0x56   :  { %1097 = vmatprep.subr.bf16.mxu1 %v1220_v34  ;;  %v150_v32 = vcombine.high %v132_v28, %v146_v29  ;;  %v149_v33 = vcombine.low %v132_v28, %v146_v29 }
  0x57   :  { %v164_v34 = vpack.c.bf16 %v148_v30, %v148_v30 }
  0x58   :  { %1076 = vmatpush3.bf16.msra.mxu0 %v1221_v35  ;;  %v163_v35 = vpack.c.bf16 %v147_v31, %v147_v31  ;;  %v165_v38 = vpack.c.bf16 %v149_v33, %v149_v33 }
  0x59   :  { %1098 = vmatpush3.bf16.msra.mxu1 %v1222_v36  ;;  %1105 = vmatprep.subr.bf16.mxu0 %v1229_v44  ;;  %v166_v36 = vpack.c.bf16 %v150_v32, %v150_v32  ;;  %v1272_v44 = vld [vmem:[#allocation7 + $0x28] sm:$0xff]  }
  0x5a   :  { %1127 = vmatprep.subr.bf16.mxu1 %v1230_v47 }
  0x5b   :  { %719 = vmatmul.mubr.bf16.vlgmr.msra.gmra.mrb[0].mxu0 %v159_v55 }
  0x5c   :  { %759 = vmatmul.mubr.bf16.vlgmr.msra.gmra.mrb[0].mxu1 %v161_v58  ;;  %1106 = vmatpush3.bf16.msra.mxu0 %v1231_v50 }
  0x5d   :  { %1128 = vmatpush3.bf16.msra.mxu1 %v1232_v53  ;;  %1107 = vmatprep.subr.bf16.mxu0 %v1233_v56 }
  0x5e   :  { %1129 = vmatprep.subr.bf16.mxu1 %v1234_v59  ;;  %798 = vmatprep.mubr.bf16.mxu0 %v164_v34 }
  0x5f   :  { %838 = vmatprep.mubr.bf16.mxu1 %v166_v36 }
  0x60   :  { %1108 = vmatpush3.bf16.msra.mxu0 %v1235_v60 }
  0x61   :  { %1130 = vmatpush3.bf16.msra.mxu1 %v1236_v61  ;;  %1109 = vmatprep.subr.bf16.mxu0 %v1237_v62 }
  0x62   :  { %1131 = vmatprep.subr.bf16.mxu1 %v1238_v63 }
  0x64   :  { %1110 = vmatpush3.bf16.msra.mxu0 %v1239_v0 }
  0x65   :  { %1132 = vmatpush3.bf16.msra.mxu1 %v1240_v1  ;;  %1111 = vmatprep.subr.bf16.mxu0 %v1241_v2 }
  0x66   :  { %1133 = vmatprep.subr.bf16.mxu1 %v1242_v3 }
  0x68   :  { %1112 = vmatpush3.bf16.msra.mxu0 %v1243_v4 }
  0x69   :  { %1134 = vmatpush3.bf16.msra.mxu1 %v1244_v5  ;;  %1113 = vmatprep.subr.bf16.mxu0 %v1245_v6 }
  0x6a   :  { %1135 = vmatprep.subr.bf16.mxu1 %v1246_v7 }
  0x6c   :  { %1114 = vmatpush3.bf16.msra.mxu0 %v1247_v8 }
  0x6d   :  { %1136 = vmatpush3.bf16.msra.mxu1 %v1248_v9  ;;  %1115 = vmatprep.subr.bf16.mxu0 %v1249_v10  ;;  %v1052_v10 = vld [vmem:[%s1490_s4] ss:$0 sm:$0xff] }
  0x6e   :  { %1137 = vmatprep.subr.bf16.mxu1 %v1250_v11 }
  0x70   :  { %1116 = vmatpush3.bf16.msra.mxu0 %v1251_v12 }
  0x71   :  { %1138 = vmatpush3.bf16.msra.mxu1 %v1252_v13  ;;  %1117 = vmatprep.subr.bf16.mxu0 %v1253_v14 }
  0x72   :  { %1139 = vmatprep.subr.bf16.mxu1 %v1254_v15 }
  0x74   :  { %1118 = vmatpush3.bf16.msra.mxu0 %v1255_v16 }
  0x75   :  { %1140 = vmatpush3.bf16.msra.mxu1 %v1256_v17  ;;  %1119 = vmatprep.subr.bf16.mxu0 %v1257_v18 }
  0x76   :  { %1141 = vmatprep.subr.bf16.mxu1 %v1258_v19 }
  0x78   :  { %1120 = vmatpush3.bf16.msra.mxu0 %v1259_v20 }
  0x79   :  { %1142 = vmatpush3.bf16.msra.mxu1 %v1260_v21  ;;  %1158 = vmatprep.subr.bf16.mxu0 %v1381_v40 }
  0x7b   :  { %799 = vmatmul.mubr.bf16.vlgmr.msra.gmra.mrb[4].mxu0 %v163_v35 }
  0x7c   :  { %839 = vmatmul.mubr.bf16.vlgmr.msra.gmra.mrb[4].mxu1 %v165_v38  ;;  %1159 = vmatpush3.bf16.msra.mxu0 %v1267_v39 }
  0x7d   :  { %1160 = vmatprep.subr.bf16.mxu0 %v1381_v40  ;;  %1174 = vmatprep.mubr.msk.bf16.mxu0 %vm1382_vm0, %v1381_v40 }
  0x80   :  { %1161 = vmatpush3.bf16.msra.mxu0 %v1268_v41 }
  0x81   :  { %1162 = vmatprep.subr.bf16.mxu0 %v1381_v40 }
  0x84   :  { %1163 = vmatpush3.bf16.msra.mxu0 %v1269_v37 }
  0x85   :  { %1164 = vmatprep.subr.bf16.mxu0 %v1381_v40 }
  0x88   :  { %1165 = vmatpush3.bf16.msra.mxu0 %v1270_v42 }
  0x89   :  { %1166 = vmatprep.subr.bf16.mxu0 %v1381_v40 }
  0x8c   :  { %1167 = vmatpush3.bf16.msra.mxu0 %v1271_v43 }
  0x8d   :  { %1168 = vmatprep.subr.bf16.mxu0 %v1381_v40 }
  0x90   :  { %1169 = vmatpush3.bf16.msra.mxu0 %v1272_v44 }
  0x91   :  { %1170 = vmatprep.subr.bf16.mxu0 %v1381_v40 }
  0x94   :  { %1171 = vmatpush3.bf16.msra.mxu0 %v1273_v45 }
  0x95   :  { %1172 = vmatprep.subr.bf16.mxu0 %v1381_v40 }
  0x98   :  { %1173 = vmatpush3.bf16.msra.mxu0 %v1274_v46 }
 0x12e   :  { %v1077_v47 = vpop.f32.mrb[0].mxu0 }
 0x12f   :  { %v1099_v48 = vpop.f32.mrb[0].mxu1  ;;  %v1078_v50 = vpop.f32.mrb[1].mxu0 }
 0x130   :  { %v1079_v51 = vadd.f32 %v1078_v50, %v1077_v47  ;;  %v1100_v52 = vpop.f32.mrb[1].mxu1  ;;  %v1080_v53 = vpop.f32.mrb[2].mxu0 }
 0x131   :  { %v1101_v54 = vadd.f32 %v1100_v52, %v1099_v48  ;;  %v1102_v55 = vpop.f32.mrb[2].mxu1  ;;  %v1081_v56 = vpop.f32.mrb[3].mxu0 }
 0x132   :  { %v721_v57 = vadd.f32 %v1079_v51, %v987_v49  ;;  %v1103_v58 = vpop.f32.mrb[3].mxu1 }
 0x134   :  { %v761_v59 = vadd.f32 %v1101_v54, %v721_v57 }
 0x14e   :  { %v1121_v60 = vpop.f32.mrb[4].mxu0 }
 0x14f   :  { %v1143_v61 = vpop.f32.mrb[4].mxu1  ;;  %v1122_v62 = vpop.f32.mrb[5].mxu0 }
 0x150   :  { %v1123_v63 = vadd.f32 %v1122_v62, %v1121_v60  ;;  %v1144_v0 = vpop.f32.mrb[5].mxu1  ;;  %v1124_v1 = vpop.f32.mrb[6].mxu0 }
 0x151   :  { %v1145_v2 = vadd.f32 %v1144_v0, %v1143_v61  ;;  %v1146_v3 = vpop.f32.mrb[6].mxu1  ;;  %v1125_v4 = vpop.f32.mrb[7].mxu0 }
 0x152   :  { %v801_v5 = vadd.f32 %v1123_v63, %v761_v59  ;;  %v1147_v6 = vpop.f32.mrb[7].mxu1 }
 0x154   :  { %v841_v7 = vadd.f32 %v1145_v2, %v801_v5 }
 0x156   :  { %v846_v8 = vmax.f32 %v841_v7, 0.0 }
 0x158   :  { %v847_v9 = vpack.c.bf16 %v846_v8, %v846_v8 }
 0x15a   :  { %1175 = vmatmul.mubr.bf16.vlgmr.msra.gmra.mrb[8].mxu0 %v847_v9 }
 0x22d   :  { %v953_v11 = vpop.f32.mrb[8].mxu0 }
 0x22e   :  { %v954_v12 = vadd.f32 %v1052_v10, %v953_v11  ;;  %v1176_v13 = vpop.f32.mrb[9].mxu0 }
 0x22f   :  { %v956_v14 = vpop.f32.mrb[10].mxu0 }
 0x230   :  { %959 = vmax.xlane.f32.xlu0 %v954_v12  ;;  %v1177_v15 = vpop.f32.mrb[11].mxu0 }
 0x2bd   :  { %v960_v16 = vpop.xlane.xlu0 %959 }
 0x2be   :  { %v961_v17 = vsub.f32 %v954_v12, %v960_v16 }
 0x2c0   :  { %v962_v18 = vmul.f32 1.442695, %v961_v17 }
 0x2c2   :  { %1275 = vpow2.f32 %v962_v18 }
 0x2cc   :  { %v1276_v19 = vpop.eup %1275 }
 0x2cd   :  { %964 = vadd.xlane.f32.xlu0 %v1276_v19 }
 0x35a   :  { %v965_v20 = vpop.xlane.xlu0 %964 }
 0x35b   :  { %1277 = vrcp.f32 %v965_v20 }
 0x365   :  { %v1278_v21 = vpop.eup %1277 }
 0x366   :  { %v967_v22 = vmul.f32 %v1278_v21, %v1276_v19 }
 0x368   :  { %968 = vst [vmem:[#allocation8] sm:$0xff] %v967_v22 }
 0x369   :  { %973 = vsyncadd [#allocation4], 96  ;;  %s1383_s9 = smov [#allocation8]  }
 0x36a   :  { %s974_s4 = sshll.u32 %s1383_s9, 4  ;;  %s975_s4 = int_to_ptr.vmem [resolvable:$true] %s974_s4 }
 0x36b   :  { %s1345_s10 = scalar_lea.vmem %s975_s4, 32  ;;  %s1349_s11 = scalar_lea.vmem %s975_s4, 128 }
 0x36c   :  { %p1346_p10 = scmp.ne.s32.totalorder %s975_s4, %s1345_s10  ;;  %p1350_p11 = scmp.lt.s32.totalorder %s975_s4, %s975_s4 }
 0x36d   :  { %p1351_p12 = scmp.lt.s32.totalorder %s1349_s11, %s1345_s10 }
 0x36f   :  { %p1352_p13 = por %p1351_p12, %p1350_p11 }
 0x371   :  { %p1353_p0 = pnand %p1352_p13, %p1346_p10 }
 0x373   :  { %1356 = shalt.err (!%p1353_p0)
}
 0x374   :  { %s1357_s14 = scalar_lea.hbm %s1491_s5, 32 }
 0x375   :  { %p1358_p1 = scmp.ne.s32.totalorder %s1491_s5, %s1357_s14  ;;  %p1361_p2 = scmp.lt.u32.totalorder %s1357_s14, %s1491_s5 }
 0x377   :  { %p1363_p3 = pnand %p1361_p2, %p1358_p1 }
 0x379   :  { %1366 = shalt.err (!%p1363_p3)
}
 0x37a   :  { %s1384_s18 = smov 32   ;;  %s1385_s19 = smov 2  }
 0x37b   :  { %980 = dma.vmem_to_hbm [thread:$0]  %s975_s4, 32, %s1491_s5, [#allocation4], %s1384_s18, %s1384_s18, %s1385_s19  }
 0x37c   :  { %1371 = dma.done.wait [#allocation4], 128  }
 0x37d   :  { %1372 = vsyncadd [#allocation4], 4294967168 }
 0x37e   :  { %984 = vsyncpa [#allocation3], 1 }
 0x37f   :  { %985 = vsyncpa [#allocation6], 1 }
 0x380   :  { %986 = vsyncpa [#allocation4], 1 }

</bundles_post_ra>
